<compile_context>
chip_gen: v6e
topology: v6e:2x2x1
jax: 0.10.0
libtpu: 0.0.40
codegen_flags: <defaults>
</compile_context>

<pallas_src>
import functools

import jax
import jax.numpy as jnp
from jax.experimental import pallas as pl
from jax.experimental.pallas import tpu as pltpu


def _round_up(x, m):
    return ((x + m - 1) // m) * m


def _vmem_capacity_bytes():
    # Conservative default (v7x per-TC VMEM) if the query is unavailable.
    try:
        return int(pltpu.get_tpu_info().vmem_capacity_bytes)
    except Exception:
        return 64 * 1024 * 1024


def _qkv_resident_kernel(x_ref, w_ref, b_ref, q_ref, k_ref, v_ref, *, split_size):
    # x_ref: (tm, E); w_ref: (E, 3E) resident across all row tiles; b_ref: (1, 3E)
    acc = jnp.dot(x_ref[...], w_ref[...], preferred_element_type=jnp.float32)
    acc = acc + b_ref[...].astype(jnp.float32)
    out = acc.astype(q_ref.dtype)
    q_ref[...] = out[:, :split_size]
    k_ref[...] = out[:, split_size:2 * split_size]
    v_ref[...] = out[:, 2 * split_size:]


def _qkv_stream_kernel(x_ref, w_ref, b_ref, o_ref):
    # x_ref: (tm, E); w_ref: (E, split) slab for the current split (outer axis);
    # b_ref: (1, split); o_ref: (1, tm, split) block of the stacked output.
    acc = jnp.dot(x_ref[...], w_ref[...], preferred_element_type=jnp.float32)
    acc = acc + b_ref[...].astype(jnp.float32)
    o_ref[0] = acc.astype(o_ref.dtype)


def gpt2_qkv_projection(hidden_states, w, b, split_size, *, tm=None, weight_resident=None):
    """hidden_states: [B, S, E], w: [E, 3E], b: [3E] -> (q, k, v), each [B, S, split_size]."""
    # TODO(synk): cross-attention variant (encoder_hidden_states + separate q_attn
    # weight) is not implemented; only the standard self-attention c_attn path.
    B, S, E = hidden_states.shape
    N = w.shape[-1]
    assert w.shape[0] == E and N == 3 * split_size, "weight must be [E, 3*split_size]"

    M = B * S
    x2d = hidden_states.reshape(M, E)
    b2d = b.reshape(1, N)
    out_dtype = hidden_states.dtype

    isz = jnp.dtype(hidden_states.dtype).itemsize
    wsz = jnp.dtype(w.dtype).itemsize
    bsz = jnp.dtype(b.dtype).itemsize

    # Native sublane packing for the activation dtype.
    sub = {1: 32, 2: 16}.get(isz, 8)
    if tm is None:
        tm = 512 if isz <= 2 else 256
    tm = max(sub, min(tm, _round_up(M, sub)))
    # v7x megacore: prefer >= 2 row tiles when there is enough work.
    if pl.cdiv(M, tm) < 2 and M > 2 * sub:
        tm = max(sub, _round_up(pl.cdiv(M, 2), sub))
    n_row_tiles = pl.cdiv(M, tm)

    cap = _vmem_capacity_bytes()
    budget = int(0.75 * cap)  # headroom for compiler scratch (matters on 64 MiB v7x)

    # Conservative VMEM estimates (assume double-buffering on every BlockSpec).
    resident_est = (2 * tm * E * isz            # x tile
                    + 2 * E * N * wsz           # full W
                    + 2 * N * bsz               # bias
                    + 2 * 3 * tm * split_size * isz  # q/k/v tiles
                    + tm * N * 4)               # f32 accumulator
    stream_est = (2 * tm * E * isz
                  + 2 * E * split_size * wsz
                  + 2 * split_size * bsz
                  + 2 * tm * split_size * isz
                  + tm * split_size * 4)

    if weight_resident is None:
        # Streaming slabs column-slice W, so only use it for lane-aligned splits.
        weight_resident = (resident_est <= budget) or (split_size % 128 != 0)

    if weight_resident:
        vmem_limit = int(min(budget, max(int(1.5 * resident_est), 16 * 1024 * 1024)))
        cost = pl.CostEstimate(
            flops=2 * M * E * N,
            transcendentals=0,
            bytes_accessed=M * E * isz + E * N * wsz + N * bsz + M * N * isz,
        )
        kernel = functools.partial(_qkv_resident_kernel, split_size=split_size)
        q2d, k2d, v2d = pl.pallas_call(
            kernel,
            out_shape=tuple(
                jax.ShapeDtypeStruct((M, split_size), out_dtype) for _ in range(3)
            ),
            grid_spec=pltpu.PrefetchScalarGridSpec(
                num_scalar_prefetch=0,
                grid=(n_row_tiles,),
                in_specs=[
                    # Row tile of activations.
                    pl.BlockSpec((tm, E), lambda i: (i, 0)),
                    # Full weight matrix; constant block index -> DMA'd once per call.
                    pl.BlockSpec((E, N), lambda i: (0, 0)),
                    # Full bias.
                    pl.BlockSpec((1, N), lambda i: (0, 0)),
                ],
                out_specs=[
                    pl.BlockSpec((tm, split_size), lambda i: (i, 0)),
                    pl.BlockSpec((tm, split_size), lambda i: (i, 0)),
                    pl.BlockSpec((tm, split_size), lambda i: (i, 0)),
                ],
            ),
            compiler_params=pltpu.CompilerParams(
                dimension_semantics=("parallel",),
                vmem_limit_bytes=vmem_limit,
            ),
            cost_estimate=cost,
        )(x2d, w, b2d)
    else:
        assert split_size % 128 == 0, "streaming path requires a lane-aligned split_size"
        vmem_limit = int(min(budget, max(int(1.5 * stream_est), 16 * 1024 * 1024)))
        cost = pl.CostEstimate(
            flops=2 * M * E * N,
            transcendentals=0,
            # x is re-read once per split (3x); each weight slab is read once.
            bytes_accessed=3 * M * E * isz + E * N * wsz + N * bsz + M * N * isz,
        )
        qkv = pl.pallas_call(
            _qkv_stream_kernel,
            out_shape=jax.ShapeDtypeStruct((3, M, split_size), out_dtype),
            grid_spec=pltpu.PrefetchScalarGridSpec(
                num_scalar_prefetch=0,
                # Split axis OUTER: each (E, split) weight slab streamed once per call.
                grid=(3, n_row_tiles),
                in_specs=[
                    pl.BlockSpec((tm, E), lambda j, i: (i, 0)),
                    pl.BlockSpec((E, split_size), lambda j, i: (0, j)),
                    pl.BlockSpec((1, split_size), lambda j, i: (0, j)),
                ],
                out_specs=pl.BlockSpec((1, tm, split_size), lambda j, i: (j, i, 0)),
            ),
            compiler_params=pltpu.CompilerParams(
                dimension_semantics=("arbitrary", "parallel"),
                vmem_limit_bytes=vmem_limit,
            ),
            cost_estimate=cost,
        )(x2d, w, b2d)
        q2d, k2d, v2d = qkv[0], qkv[1], qkv[2]

    q = q2d.reshape(B, S, split_size)
    k = k2d.reshape(B, S, split_size)
    v = v2d.reshape(B, S, split_size)
    return q, k, v


def gpt2_qkv_projection_ref(hidden_states, w, b, split_size):
    y = jnp.einsum(
        "bse,ef->bsf",
        hidden_states.astype(jnp.float32),
        w.astype(jnp.float32),
    ) + b.astype(jnp.float32)
    return (
        y[..., 0 * split_size:1 * split_size],
        y[..., 1 * split_size:2 * split_size],
        y[..., 2 * split_size:3 * split_size],
    )


if __name__ == "__main__":
    key = jax.random.PRNGKey(0)
    kx, kw, kb, kx2, kw2, kb2 = jax.random.split(key, 6)

    # --- Small self-attn shapes consistent with the module: embed_dim=32 ---
    B, S, E = 2, 8, 32
    split_size = E
    hidden_states = jax.random.normal(kx, (B, S, E), dtype=jnp.float32)
    w = 0.02 * jax.random.normal(kw, (E, 3 * E), dtype=jnp.float32)
    b = 0.01 * jax.random.normal(kb, (3 * E,), dtype=jnp.float32)

    # f32, weight-resident path (default).
    q, k, v = gpt2_qkv_projection(hidden_states, w, b, split_size)
    q, k, v = jax.block_until_ready((q, k, v))
    q_ref, k_ref, v_ref = gpt2_qkv_projection_ref(hidden_states, w, b, split_size)
    assert q.shape == (B, S, split_size)
    assert jnp.allclose(q, q_ref, atol=1e-5, rtol=1e-5)
    assert jnp.allclose(k, k_ref, atol=1e-5, rtol=1e-5)
    assert jnp.allclose(v, v_ref, atol=1e-5, rtol=1e-5)

    # bf16 storage path (f32 accumulation stays inside the kernel).
    hs_bf16 = hidden_states.astype(jnp.bfloat16)
    w_bf16 = w.astype(jnp.bfloat16)
    qb, kb_, vb = gpt2_qkv_projection(hs_bf16, w_bf16, b, split_size)
    qb, kb_, vb = jax.block_until_ready((qb, kb_, vb))
    qbr, kbr, vbr = gpt2_qkv_projection_ref(hs_bf16, w_bf16, b, split_size)
    assert jnp.allclose(qb.astype(jnp.float32), qbr, atol=2e-2, rtol=2e-2)
    assert jnp.allclose(kb_.astype(jnp.float32), kbr, atol=2e-2, rtol=2e-2)
    assert jnp.allclose(vb.astype(jnp.float32), vbr, atol=2e-2, rtol=2e-2)

    # Ragged row count (M=21 not a multiple of tm) + megacore-friendly 2-tile grid.
    hs_r = jax.random.normal(kx2, (3, 7, E), dtype=jnp.float32)
    qr, kr, vr = gpt2_qkv_projection(hs_r, w, b, split_size)
    qr, kr, vr = jax.block_until_ready((qr, kr, vr))
    qrr, krr, vrr = gpt2_qkv_projection_ref(hs_r, w, b, split_size)
    assert jnp.allclose(qr, qrr, atol=1e-5, rtol=1e-5)
    assert jnp.allclose(kr, krr, atol=1e-5, rtol=1e-5)
    assert jnp.allclose(vr, vrr, atol=1e-5, rtol=1e-5)

    # Streaming fallback path (used when full W cannot stay VMEM-resident);
    # exercised with a lane-aligned split (128) so weight slabs are 128-wide.
    E2 = 128
    split2 = E2
    hs2 = jax.random.normal(kx2, (B, S, E2), dtype=jnp.float32)
    w2 = 0.02 * jax.random.normal(kw2, (E2, 3 * E2), dtype=jnp.float32)
    b2 = 0.01 * jax.random.normal(kb2, (3 * E2,), dtype=jnp.float32)
    q2, k2, v2 = gpt2_qkv_projection(hs2, w2, b2, split2, weight_resident=False)
    q2, k2, v2 = jax.block_until_ready((q2, k2, v2))
    q2r, k2r, v2r = gpt2_qkv_projection_ref(hs2, w2, b2, split2)
    assert jnp.allclose(q2, q2r, atol=1e-3, rtol=1e-3)
    assert jnp.allclose(k2, k2r, atol=1e-3, rtol=1e-3)
    assert jnp.allclose(v2, v2r, atol=1e-3, rtol=1e-3)

    print("KERNEL_OK")
</pallas_src>

<mosaic_0001>
module attributes {stable_mosaic.version = 11 : i64} {
  func.func @_qkv_resident_kernel(%arg0: i32, %arg1: memref<16x32xf32, #tpu.memory_space<vmem>>, %arg2: memref<32x96xf32, #tpu.memory_space<vmem>>, %arg3: memref<1x96xf32, #tpu.memory_space<vmem>>, %arg4: memref<16x32xf32, #tpu.memory_space<vmem>>, %arg5: memref<16x32xf32, #tpu.memory_space<vmem>>, %arg6: memref<16x32xf32, #tpu.memory_space<vmem>>) attributes {dimension_semantics = [#tpu.dimension_semantics<parallel>], iteration_bounds = array<i64: 1>, scalar_prefetch = 0 : i64, scratch_operands = 0 : i64, tpu.core_type = #tpu.core_type<tc>, window_params = [{transform_indices = @transform_0, window_bounds = array<i64: 16, 32>}, {pipeline_mode = #tpu.pipeline_mode<synchronous>, transform_indices = @transform_1, window_bounds = array<i64: 32, 96>}, {pipeline_mode = #tpu.pipeline_mode<synchronous>, transform_indices = @transform_2, window_bounds = array<i64: 1, 96>}, {transform_indices = @transform_3, window_bounds = array<i64: 16, 32>}, {transform_indices = @transform_4, window_bounds = array<i64: 16, 32>}, {transform_indices = @transform_5, window_bounds = array<i64: 16, 32>}]} {
    %c0 = arith.constant 0 : index
    %c0_0 = arith.constant 0 : index
    %0 = vector.load %arg1[%c0, %c0_0] : memref<16x32xf32, #tpu.memory_space<vmem>>, vector<16x32xf32>
    %c0_1 = arith.constant 0 : index
    %c0_2 = arith.constant 0 : index
    %1 = vector.load %arg2[%c0_1, %c0_2] : memref<32x96xf32, #tpu.memory_space<vmem>>, vector<32x96xf32>
    %cst = arith.constant dense<0.000000e+00> : vector<16x96xf32>
    %2 = tpu.matmul %0, %1, %cst {dimension_numbers = #tpu.dot_dimension_numbers<[1], [0], [0], [1], [0, 0, 1, 1], [], []>} : vector<16x32xf32>, vector<32x96xf32>, vector<16x96xf32> -> vector<16x96xf32>
    %c0_3 = arith.constant 0 : index
    %c0_4 = arith.constant 0 : index
    %3 = vector.load %arg3[%c0_3, %c0_4] : memref<1x96xf32, #tpu.memory_space<vmem>>, vector<1x96xf32>
    %4 = vector.broadcast %3 : vector<1x96xf32> to vector<16x96xf32>
    %5 = arith.addf %2, %4 : vector<16x96xf32>
    %6 = vector.extract_strided_slice %5 {offsets = [0, 0], sizes = [16, 32], strides = [1, 1]} : vector<16x96xf32> to vector<16x32xf32>
    %c0_5 = arith.constant 0 : index
    %c0_6 = arith.constant 0 : index
    %7 = vector.load %arg4[%c0_5, %c0_6] : memref<16x32xf32, #tpu.memory_space<vmem>>, vector<16x32xf32>
    tpu.vector_store %arg4[%c0_5, %c0_6], %6 {strides = array<i32>} : memref<16x32xf32, #tpu.memory_space<vmem>>, vector<16x32xf32>,
    %8 = vector.extract_strided_slice %5 {offsets = [0, 32], sizes = [16, 32], strides = [1, 1]} : vector<16x96xf32> to vector<16x32xf32>
    %c0_7 = arith.constant 0 : index
    %c0_8 = arith.constant 0 : index
    %9 = vector.load %arg5[%c0_7, %c0_8] : memref<16x32xf32, #tpu.memory_space<vmem>>, vector<16x32xf32>
    tpu.vector_store %arg5[%c0_7, %c0_8], %8 {strides = array<i32>} : memref<16x32xf32, #tpu.memory_space<vmem>>, vector<16x32xf32>,
    %10 = vector.extract_strided_slice %5 {offsets = [0, 64], sizes = [16, 32], strides = [1, 1]} : vector<16x96xf32> to vector<16x32xf32>
    %c0_9 = arith.constant 0 : index
    %c0_10 = arith.constant 0 : index
    %11 = vector.load %arg6[%c0_9, %c0_10] : memref<16x32xf32, #tpu.memory_space<vmem>>, vector<16x32xf32>
    tpu.vector_store %arg6[%c0_9, %c0_10], %10 {strides = array<i32>} : memref<16x32xf32, #tpu.memory_space<vmem>>, vector<16x32xf32>,
    return
  }
  func.func @transform_0(%arg0: i32) -> (i32, i32) {
    %c0_i32 = arith.constant 0 : i32
    %c0_i32_0 = arith.constant 0 : i32
    return %arg0, %c0_i32 : i32, i32
  }
  func.func @transform_1(%arg0: i32) -> (i32, i32) {
    %c0_i32 = arith.constant 0 : i32
    %c0_i32_0 = arith.constant 0 : i32
    %c0_i32_1 = arith.constant 0 : i32
    return %c0_i32, %c0_i32_0 : i32, i32
  }
  func.func @transform_2(%arg0: i32) -> (i32, i32) {
    %c0_i32 = arith.constant 0 : i32
    %c0_i32_0 = arith.constant 0 : i32
    %c0_i32_1 = arith.constant 0 : i32
    return %c0_i32, %c0_i32_0 : i32, i32
  }
  func.func @transform_3(%arg0: i32) -> (i32, i32) {
    %c0_i32 = arith.constant 0 : i32
    %c0_i32_0 = arith.constant 0 : i32
    return %arg0, %c0_i32 : i32, i32
  }
  func.func @transform_4(%arg0: i32) -> (i32, i32) {
    %c0_i32 = arith.constant 0 : i32
    %c0_i32_0 = arith.constant 0 : i32
    return %arg0, %c0_i32 : i32, i32
  }
  func.func @transform_5(%arg0: i32) -> (i32, i32) {
    %c0_i32 = arith.constant 0 : i32
    %c0_i32_0 = arith.constant 0 : i32
    return %arg0, %c0_i32 : i32, i32
  }
}

</mosaic_0001>

<bundles_post_ra>
// kernel: tpu_custom_call.1
= control target key start
LH: loop header
LB: loop body
LE: loop exit
PB: predicated region body
PF: predicated region fallthrough
CT: control target
= control target key end

     0   :  { %11 = vsyncpa [#allocation3], 0  ;;  %s428_s0 = inlined_call_operand.hbm [shape: f32[16,32], index: 0, kind: input, shape index: {}]   ;;  %s429_s1 = inlined_call_operand.hbm [shape: f32[32,96], index: 1, kind: input, shape index: {}]   ;;  %s430_s2 = inlined_call_operand.vmem [shape: f32[1,96], index: 2, kind: input, shape index: {}]   ;;  %s431_s3 = inlined_call_operand.hbm [shape: f32[16,32], index: 3, kind: output, shape index: {0}]   ;;  %s432_s4 = inlined_call_operand.hbm [shape: f32[16,32], index: 4, kind: output, shape index: {1}]   ;;  %s433_s5 = inlined_call_operand.hbm [shape: f32[16,32], index: 5, kind: output, shape index: {2}]  }
   0x1   :  { %12 = vsyncpa [#allocation6], 0 }
   0x2   :  { %13 = vsyncpa [#allocation4], 0 }
   0x3   :  { %14 = vsyncpa [#allocation9], 0  ;;  %s348_s18 = smov [#allocation2]  }
   0x4   :  { %s20_s19 = sshll.u32 %s348_s18, 4  ;;  %s21_s19 = int_to_ptr.vmem [resolvable:$true] %s20_s19 }
   0x5   :  { %s248_s20 = scalar_lea.vmem %s21_s19, 256  ;;  %p253_p1 = scmp.lt.s32.totalorder %s21_s19, %s21_s19 }
   0x6   :  { %p249_p0 = scmp.ne.s32.totalorder %s21_s19, %s248_s20  ;;  %p254_p2 = scmp.lt.s32.totalorder %s248_s20, %s248_s20 }
   0x8   :  { %p255_p3 = por %p254_p2, %p253_p1 }
   0xa   :  { %p256_p4 = pnand %p255_p3, %p249_p0 }
   0xc   :  { %259 = shalt.err (!%p256_p4)
}
   0xd   :  { %s349_s21 = smov 128   ;;  %s350_s22 = smov 8  }
   0xe   :  { %26 = dma.hbm_to_vmem [thread:$0]  %s428_s0, 256, %s21_s19, [#allocation3], %s349_s21, %s349_s21, %s350_s22  }
   0xf   :  { %s351_s25 = smov [#allocation5]  }
  0x10   :  { %s32_s26 = sshll.u32 %s351_s25, 4  ;;  %s33_s26 = int_to_ptr.vmem [resolvable:$true] %s32_s26 }
  0x11   :  { %s268_s27 = scalar_lea.vmem %s33_s26, 512  ;;  %p273_p6 = scmp.lt.s32.totalorder %s33_s26, %s33_s26 }
  0x12   :  { %p269_p5 = scmp.ne.s32.totalorder %s33_s26, %s268_s27  ;;  %p274_p7 = scmp.lt.s32.totalorder %s268_s27, %s268_s27 }
  0x14   :  { %p275_p8 = por %p274_p7, %p273_p6 }
  0x16   :  { %p276_p9 = pnand %p275_p8, %p269_p5 }
  0x18   :  { %279 = shalt.err (!%p276_p9)
}
  0x19   :  { %38 = dma.hbm_to_vmem [thread:$0]  %s429_s1, 512, %s33_s26, [#allocation6], %s349_s21, %s349_s21, %s350_s22  }
  0x1a   :  { %340 = dma.done.wait [#allocation3], 256  }
  0x1b   :  { %341 = vsyncadd [#allocation3], 4294967040 }
  0x1c   :  { %342 = dma.done.wait [#allocation6], 512  }
  0x1d   :  { %343 = vsyncadd [#allocation6], 4294966784  ;;  %vm60_vm0 = vcmask 261120   ;;  %v52_v0 = vld [vmem:[#allocation5 + $0x18] sm:$0xff]  ;;  %v51_v1 = vld [vmem:[#allocation5 + $0x10] sm:$0xff]  ;;  %s352_s30 = smov [#allocation7]  }
  0x1e   :  { %220 = vmatprep.subr.mxu0 %v52_v0  ;;  %v47_v2 = vld [vmem:[#allocation2] sm:$0xff]  ;;  %v50_v3 = vld [vmem:[#allocation5 + $0x8] sm:$0xff]  ;;  %v49_v4 = vld [vmem:[#allocation5] sm:$0xff]  ;;  %s167_s6 = sshll.u32 %s352_s30, 4  ;;  %s353_s7 = smov 64   ;;  %s168_s6 = int_to_ptr.vmem [resolvable:$true] %s167_s6 }
  0x1f   :  { %221 = vmatpush3.msra.mxu0 %v52_v0  ;;  %228 = vmatprep.mubr.msk.f32.mxu0 %vm60_vm0, %v47_v2  ;;  %v48_v5 = vld [vmem:[#allocation2 + $0x8] sm:$0xff]  ;;  %v211_v6 = vld [vmem:[%s430_s2] ss:$0 sm:$0xff]  ;;  %s354_s8 = smov 96   ;;  %s280_s9 = scalar_lea.vmem %s168_s6, 256 }
  0x20   :  { %222 = vmatprep.subr.mxu0 %v51_v1  ;;  %p281_p10 = scmp.ne.s32.totalorder %s168_s6, %s280_s9  ;;  %p285_p11 = scmp.lt.s32.totalorder %s168_s6, %s168_s6 }
  0x21   :  { %223 = vmatpush3.msra.mxu0 %v51_v1  ;;  %p286_p12 = scmp.lt.s32.totalorder %s280_s9, %s280_s9 }
  0x22   :  { %224 = vmatprep.subr.mxu0 %v50_v3 }
  0x23   :  { %225 = vmatpush3.msra.mxu0 %v50_v3  ;;  %p287_p13 = por %p286_p12, %p285_p11 }
  0x24   :  { %226 = vmatprep.subr.mxu0 %v49_v4 }
  0x25   :  { %227 = vmatpush3.msra.mxu0 %v49_v4  ;;  %p288_p0 = pnand %p287_p13, %p281_p10 }
  0x26   :  { %229 = vmatmul.mubr.msk.f32.vlgmr.msra.gmra.mxu0 %vm60_vm0, %v48_v5 }
  0xe6   :  { %v230_v7 = vpop.f32.mrf.mxu0 }
  0xe7   :  { %v139_v8 = vadd.f32 %v230_v7, %v211_v6 }
  0xe8   :  { %v133_v9 = vpop.f32.mrf.mxu0 }
  0xe9   :  { %143 = vst.msk [vmem:[#allocation7 + $0x8] sm:$0xff] %vm60_vm0, %v139_v8  ;;  %v134_v10 = vadd.f32 %v211_v6, %v133_v9 }
  0xeb   :  { %142 = vst.msk [vmem:[#allocation7] sm:$0xff] %vm60_vm0, %v134_v10  ;;  %154 = vrot.lane.b32.xlu1 %v134_v10, %s353_s7  ;;  %146 = vrot.lane.b32.xlu0 %v134_v10, %s354_s8 }
  0xec   :  { %291 = shalt.err (!%p288_p0)
}
  0xed   :  { %173 = dma.vmem_to_hbm [thread:$0]  %s168_s6, 256, %s431_s3, [#allocation4], %s349_s21, %s349_s21, %s350_s22  }
  0xee   :  { %s355_s11 = smov [#allocation8]   ;;  %s356_s13 = smov [#allocation10]  }
  0xef   :  { %156 = vrot.lane.b32.xlu1 %v139_v8, %s353_s7  ;;  %148 = vrot.lane.b32.xlu0 %v139_v8, %s354_s8  ;;  %s179_s12 = sshll.u32 %s355_s11, 4  ;;  %s191_s14 = sshll.u32 %s356_s13, 4  ;;  %s180_s12 = int_to_ptr.vmem [resolvable:$true] %s179_s12  ;;  %s192_s14 = int_to_ptr.vmem [resolvable:$true] %s191_s14 }
  0xf0   :  { %s300_s3 = scalar_lea.vmem %s180_s12, 256  ;;  %p305_p2 = scmp.lt.s32.totalorder %s180_s12, %s180_s12 }
  0xf1   :  { %p301_p1 = scmp.ne.s32.totalorder %s180_s12, %s300_s3  ;;  %p306_p3 = scmp.lt.s32.totalorder %s300_s3, %s300_s3 }
  0xf3   :  { %p307_p4 = por %p306_p3, %p305_p2 }
  0xf5   :  { %p308_p5 = pnand %p307_p4, %p301_p1 }
 0x15d   :  { %v155_v11 = vpop.permute.xlu1 %154  ;;  %v147_v12 = vpop.permute.xlu0 %146 }
 0x15e   :  { %160 = vst.msk [vmem:[#allocation10] sm:$0xff] %vm60_vm0, %v155_v11  ;;  %152 = vst.msk [vmem:[#allocation8] sm:$0xff] %vm60_vm0, %v147_v12 }
 0x161   :  { %v157_v13 = vpop.permute.xlu1 %156  ;;  %v149_v14 = vpop.permute.xlu0 %148 }
 0x162   :  { %161 = vst.msk [vmem:[#allocation10 + $0x8] sm:$0xff] %vm60_vm0, %v157_v13  ;;  %153 = vst.msk [vmem:[#allocation8 + $0x8] sm:$0xff] %vm60_vm0, %v149_v14 }
 0x163   :  { %311 = shalt.err (!%p308_p5)
}
 0x164   :  { %185 = dma.vmem_to_hbm [thread:$0]  %s180_s12, 256, %s432_s4, [#allocation9], %s349_s21, %s349_s21, %s350_s22  }
 0x165   :  { %s320_s17 = scalar_lea.vmem %s192_s14, 256  ;;  %p325_p7 = scmp.lt.s32.totalorder %s192_s14, %s192_s14 }
 0x166   :  { %p321_p6 = scmp.ne.s32.totalorder %s192_s14, %s320_s17  ;;  %p326_p8 = scmp.lt.s32.totalorder %s320_s17, %s320_s17 }
 0x168   :  { %p327_p9 = por %p326_p8, %p325_p7 }
 0x16a   :  { %p328_p10 = pnand %p327_p9, %p321_p6 }
 0x16c   :  { %331 = shalt.err (!%p328_p10)
}
 0x16d   :  { %197 = dma.vmem_to_hbm [thread:$0]  %s192_s14, 256, %s433_s5, [#allocation9], %s349_s21, %s349_s21, %s350_s22  }
 0x16e   :  { %344 = dma.done.wait [#allocation4], 256  }
 0x16f   :  { %345 = vsyncadd [#allocation4], 4294967040 }
 0x170   :  { %346 = dma.done.wait [#allocation9], 512  }
 0x171   :  { %347 = vsyncadd [#allocation9], 4294966784 }
 0x172   :  { %207 = vsyncpa [#allocation3], 1 }
 0x173   :  { %208 = vsyncpa [#allocation6], 1 }
 0x174   :  { %209 = vsyncpa [#allocation4], 1 }
 0x175   :  { %210 = vsyncpa [#allocation9], 1 }

</bundles_post_ra>
